<compile_context>
chip_gen: v7x
topology: tpu7x:2x2x1
jax: 0.10.0
libtpu: 0.0.40
codegen_flags: <defaults>
</compile_context>

<pallas_src>
import functools

import jax
import jax.numpy as jnp
from jax.experimental import pallas as pl
from jax.experimental.pallas import tpu as pltpu


def _round_up(x, m):
    return ((x + m - 1) // m) * m


def _dfl_kernel(label_ref, ids_ref, pred_ref, out_ref, *, size, ss):
    """One batch tile per grid step.

    label_ref: VMEM f32[(B, 4)]        labels for this tile
    ids_ref:   VMEM i32[(2, SS)]       row 0 = flat % S (x bin), row 1 = flat // S (y bin)
    pred_ref:  VMEM f32[(B, n_feat*SS)] flat per-element predictions (batch on sublanes)
    out_ref:   VMEM f32[(B, 1)]        per-element loss
    """
    # ---- label math, vectorized over the batch (VPU) ---------------------------
    lab = label_ref[...]                                  # (B, 4)
    g = jnp.float32(size) * lab                           # label_grid
    # NOTE: astype(int32) truncates toward zero == torch .long() for labels >= 0.
    dl = jnp.minimum(g.astype(jnp.int32), size - 1)       # dis_left, (B, 4) i32
    wl = (dl + 1).astype(jnp.float32) - g                 # weight_left
    wr = g - dl.astype(jnp.float32)                       # weight_right

    col = ids_ref[0:1, :]                                 # (1, SS) x bin of flat index
    row = ids_ref[1:2, :]                                 # (1, SS) y bin of flat index

    # ---- static lane slices: only features 0 and 1 are read --------------------
    p0 = pred_ref[:, 0:ss].astype(jnp.float32)            # (B, SS) feature 0
    p1 = pred_ref[:, ss:2 * ss].astype(jnp.float32)       # (B, SS) feature 1

    def marg_pair(p, bins, left_idx):
        # Fused gather + marginal reduce: left/right logits share one integer diff.
        diff = bins - left_idx                             # (B, SS) i32
        left = jnp.sum(jnp.where(diff == 0, p, 0.0), axis=1, keepdims=True)   # (B, 1)
        right = jnp.sum(jnp.where(diff == 1, p, 0.0), axis=1, keepdims=True)  # (B, 1)
        return left, right

    def soft_ce(la, lb, ta, tb):
        # F.cross_entropy with 2-class soft targets, reduction='none',
        # in softplus form: logsumexp(la, lb) - la = softplus(lb - la).
        d = lb - la
        sp = jnp.maximum(d, 0.0) + jnp.log1p(jnp.exp(-jnp.abs(d)))
        return ta * sp + tb * (sp - d)

    # x path: feature 0 with the x coord of pair 0 (ce_x[:,1] is dead in the ref).
    xl, xr = marg_pair(p0, col, dl[:, 0:1])
    # y path: feature 0 with y coord of pair 0, feature 1 with y coord of pair 1.
    y0l, y0r = marg_pair(p0, row, dl[:, 1:2])
    y1l, y1r = marg_pair(p1, row, dl[:, 3:4])

    ce_x = soft_ce(xl, xr, wl[:, 0:1], wr[:, 0:1])
    ce_y0 = soft_ce(y0l, y0r, wl[:, 1:2], wr[:, 1:2])
    ce_y1 = soft_ce(y1l, y1r, wl[:, 3:4], wr[:, 3:4])

    # loss_b = CE(X pair0) + CE(Y pair1) + CE(Y pair0) + CE(Y pair1)
    # (the Y pair-1 term appears twice in the PyTorch reference; reproduced exactly)
    out_ref[...] = ce_x + ce_y0 + 2.0 * ce_y1


def old_distribution_focal_loss(pred, label, size, *, max_batch_tile=256):
    """pred: (bs, n_feat, (size+1)**2), label: (bs, 4) in [0, 1]. Returns scalar loss."""
    size = int(size)
    bs, n_feat, ss = pred.shape
    S = size + 1
    SS = S * S
    assert ss == SS and n_feat >= 2

    # Pick a batch tile: multiple of 8 sublanes, minimal padding.
    num_tiles = -(-bs // max_batch_tile)
    b_tile = _round_up(-(-bs // num_tiles), 8)
    bs_pad = b_tile * num_tiles

    predf = pred.astype(jnp.float32)
    labelf = label.astype(jnp.float32)
    if bs_pad != bs:
        predf = jnp.pad(predf, ((0, bs_pad - bs), (0, 0), (0, 0)))
        labelf = jnp.pad(labelf, ((0, bs_pad - bs), (0, 0)))

    # Free reshape (no slice copy): batch on sublanes, features concatenated on lanes.
    pred_flat = predf.reshape(bs_pad, n_feat * SS)

    flat = jnp.arange(SS, dtype=jnp.int32)
    ids = jnp.stack([flat % S, flat // S], axis=0)        # (2, SS) col / row bins

    out = pl.pallas_call(
        functools.partial(_dfl_kernel, size=size, ss=SS),
        out_shape=jax.ShapeDtypeStruct((bs_pad, 1), jnp.float32),
        grid_spec=pltpu.PrefetchScalarGridSpec(
            num_scalar_prefetch=0,
            grid=(num_tiles,),
            in_specs=[
                pl.BlockSpec((b_tile, 4), lambda i: (i, 0)),            # labels
                pl.BlockSpec((2, SS), lambda i: (0, 0)),                # bin table (resident)
                pl.BlockSpec((b_tile, n_feat * SS), lambda i: (i, 0)),  # pred tile
            ],
            out_specs=pl.BlockSpec((b_tile, 1), lambda i: (i, 0)),
        ),
        compiler_params=pltpu.CompilerParams(
            # No cross-step state -> tiles are independent; shard across TCs on v7x.
            dimension_semantics=("parallel",),
        ),
    )(labelf, ids, pred_flat)

    # Final mean over the real (unpadded) batch in plain JAX.
    return jnp.mean(out[:bs, 0])


def _reference(pred, label, size):
    """Pure-JAX port of the PyTorch forward, for validation."""
    size = int(size)
    bs, n_feat, _ = pred.shape
    S = size + 1
    pm = pred.reshape(bs, n_feat, S, S)
    x_d = pm.sum(axis=-2)
    y_d = pm.sum(axis=-1)
    lg = size * label
    dl = jnp.minimum(lg.astype(jnp.int32), size - 1)
    dr = dl + 1
    wl = dr.astype(jnp.float32) - lg
    wr = lg - dl.astype(jnp.float32)
    dl2, dr2 = dl.reshape(bs, 2, 2), dr.reshape(bs, 2, 2)
    wl2, wr2 = wl.reshape(bs, 2, 2), wr.reshape(bs, 2, 2)
    idxX = jnp.stack([dl2[:, :, 0], dr2[:, :, 0]], -1)
    idxY = jnp.stack([dl2[:, :, 1], dr2[:, :, 1]], -1)
    predX = jnp.take_along_axis(x_d[:, 0:2, :], idxX, axis=-1)
    predY = jnp.take_along_axis(y_d[:, 0:2, :], idxY, axis=-1)
    tX = jnp.stack([wl2[:, :, 0], wr2[:, :, 0]], -1)
    tY = jnp.stack([wl2[:, :, 1], wr2[:, :, 1]], -1)

    def ce(logits, t):
        return -jnp.sum(t * jax.nn.log_softmax(logits, axis=-1), axis=-1)

    loss = (ce(predX[:, 0], tX[:, 0]) + ce(predY[:, 1], tY[:, 1])
            + ce(predY[:, 0], tY[:, 0]) + ce(predY[:, 1], tY[:, 1]))
    return loss.mean()


if __name__ == "__main__":
    key = jax.random.PRNGKey(0)
    k1, k2 = jax.random.split(key)
    bs, n_feat, size = 2, 4, 16
    S = size + 1
    pred = jax.random.normal(k1, (bs, n_feat, S * S), dtype=jnp.float32)
    label = jax.random.uniform(k2, (bs, 4), dtype=jnp.float32)

    out = old_distribution_focal_loss(pred, label, size)
    out = jax.block_until_ready(out)

    ref = _reference(pred, label, size)
    assert jnp.allclose(out, ref, rtol=1e-4, atol=1e-4), (float(out), float(ref))
    print("KERNEL_OK")
</pallas_src>

<mosaic_0001>
module attributes {stable_mosaic.version = 11 : i64} {
  func.func @_dfl_kernel(%arg0: i32, %arg1: memref<8x4xf32, #tpu.memory_space<vmem>>, %arg2: memref<2x289xi32, #tpu.memory_space<vmem>>, %arg3: memref<8x1156xf32, #tpu.memory_space<vmem>>, %arg4: memref<8x1xf32, #tpu.memory_space<vmem>>) attributes {dimension_semantics = [#tpu.dimension_semantics<parallel>], iteration_bounds = array<i64: 1>, scalar_prefetch = 0 : i64, scratch_operands = 0 : i64, tpu.core_type = #tpu.core_type<tc>, window_params = [{transform_indices = @transform_0, window_bounds = array<i64: 8, 4>}, {pipeline_mode = #tpu.pipeline_mode<synchronous>, transform_indices = @transform_1, window_bounds = array<i64: 2, 289>}, {transform_indices = @transform_2, window_bounds = array<i64: 8, 1156>}, {transform_indices = @transform_3, window_bounds = array<i64: 8, 1>}]} {
    %c0 = arith.constant 0 : index
    %c0_0 = arith.constant 0 : index
    %0 = vector.load %arg1[%c0, %c0_0] : memref<8x4xf32, #tpu.memory_space<vmem>>, vector<8x4xf32>
    %cst = arith.constant 1.600000e+01 : f32
    %1 = vector.broadcast %cst : f32 to vector<8x4xf32>
    %2 = arith.mulf %1, %0 : vector<8x4xf32>
    %3 = arith.fptosi %2 : vector<8x4xf32> to vector<8x4xi32>
    %c15_i32 = arith.constant 15 : i32
    %4 = vector.broadcast %c15_i32 : i32 to vector<8x4xi32>
    %5 = arith.minsi %3, %4 : vector<8x4xi32>
    %c1_i32 = arith.constant 1 : i32
    %6 = vector.broadcast %c1_i32 : i32 to vector<8x4xi32>
    %7 = arith.addi %5, %6 : vector<8x4xi32>
    %8 = arith.sitofp %7 : vector<8x4xi32> to vector<8x4xf32>
    %9 = arith.subf %8, %2 : vector<8x4xf32>
    %10 = arith.sitofp %5 : vector<8x4xi32> to vector<8x4xf32>
    %11 = arith.subf %2, %10 : vector<8x4xf32>
    %c0_1 = arith.constant 0 : index
    %c0_2 = arith.constant 0 : index
    %12 = vector.load %arg2[%c0_1, %c0_2] : memref<2x289xi32, #tpu.memory_space<vmem>>, vector<1x289xi32>
    %c1 = arith.constant 1 : index
    %c0_3 = arith.constant 0 : index
    %13 = vector.load %arg2[%c1, %c0_3] : memref<2x289xi32, #tpu.memory_space<vmem>>, vector<1x289xi32>
    %c0_4 = arith.constant 0 : index
    %c0_5 = arith.constant 0 : index
    %14 = vector.load %arg3[%c0_4, %c0_5] : memref<8x1156xf32, #tpu.memory_space<vmem>>, vector<8x289xf32>
    %c0_6 = arith.constant 0 : index
    %c289 = arith.constant 289 : index
    %15 = vector.load %arg3[%c0_6, %c289] : memref<8x1156xf32, #tpu.memory_space<vmem>>, vector<8x289xf32>
    %16 = vector.extract_strided_slice %5 {offsets = [0, 0], sizes = [8, 1], strides = [1, 1]} : vector<8x4xi32> to vector<8x1xi32>
    %17 = vector.broadcast %12 : vector<1x289xi32> to vector<8x289xi32>
    %18 = vector.broadcast %16 : vector<8x1xi32> to vector<8x289xi32>
    %19 = arith.subi %17, %18 : vector<8x289xi32>
    %c0_i32 = arith.constant 0 : i32
    %20 = vector.broadcast %c0_i32 : i32 to vector<8x289xi32>
    %21 = arith.cmpi eq, %19, %20 : vector<8x289xi32>
    %cst_7 = arith.constant 0.000000e+00 : f32
    %22 = vector.broadcast %cst_7 : f32 to vector<8x289xf32>
    %23 = arith.select %21, %14, %22 : vector<8x289xi1>, vector<8x289xf32>
    %cst_8 = arith.constant dense<0.000000e+00> : vector<8xf32>
    %24 = vector.multi_reduction <add>, %23, %cst_8 [1] : vector<8x289xf32> to vector<8xf32>
    %25 = vector.shape_cast %24 : vector<8xf32> to vector<8x1xf32>
    %c1_i32_9 = arith.constant 1 : i32
    %26 = vector.broadcast %c1_i32_9 : i32 to vector<8x289xi32>
    %27 = arith.cmpi eq, %19, %26 : vector<8x289xi32>
    %cst_10 = arith.constant 0.000000e+00 : f32
    %28 = vector.broadcast %cst_10 : f32 to vector<8x289xf32>
    %29 = arith.select %27, %14, %28 : vector<8x289xi1>, vector<8x289xf32>
    %cst_11 = arith.constant dense<0.000000e+00> : vector<8xf32>
    %30 = vector.multi_reduction <add>, %29, %cst_11 [1] : vector<8x289xf32> to vector<8xf32>
    %31 = vector.shape_cast %30 : vector<8xf32> to vector<8x1xf32>
    %32 = vector.extract_strided_slice %5 {offsets = [0, 1], sizes = [8, 1], strides = [1, 1]} : vector<8x4xi32> to vector<8x1xi32>
    %33 = vector.broadcast %13 : vector<1x289xi32> to vector<8x289xi32>
    %34 = vector.broadcast %32 : vector<8x1xi32> to vector<8x289xi32>
    %35 = arith.subi %33, %34 : vector<8x289xi32>
    %c0_i32_12 = arith.constant 0 : i32
    %36 = vector.broadcast %c0_i32_12 : i32 to vector<8x289xi32>
    %37 = arith.cmpi eq, %35, %36 : vector<8x289xi32>
    %cst_13 = arith.constant 0.000000e+00 : f32
    %38 = vector.broadcast %cst_13 : f32 to vector<8x289xf32>
    %39 = arith.select %37, %14, %38 : vector<8x289xi1>, vector<8x289xf32>
    %cst_14 = arith.constant dense<0.000000e+00> : vector<8xf32>
    %40 = vector.multi_reduction <add>, %39, %cst_14 [1] : vector<8x289xf32> to vector<8xf32>
    %41 = vector.shape_cast %40 : vector<8xf32> to vector<8x1xf32>
    %c1_i32_15 = arith.constant 1 : i32
    %42 = vector.broadcast %c1_i32_15 : i32 to vector<8x289xi32>
    %43 = arith.cmpi eq, %35, %42 : vector<8x289xi32>
    %cst_16 = arith.constant 0.000000e+00 : f32
    %44 = vector.broadcast %cst_16 : f32 to vector<8x289xf32>
    %45 = arith.select %43, %14, %44 : vector<8x289xi1>, vector<8x289xf32>
    %cst_17 = arith.constant dense<0.000000e+00> : vector<8xf32>
    %46 = vector.multi_reduction <add>, %45, %cst_17 [1] : vector<8x289xf32> to vector<8xf32>
    %47 = vector.shape_cast %46 : vector<8xf32> to vector<8x1xf32>
    %48 = vector.extract_strided_slice %5 {offsets = [0, 3], sizes = [8, 1], strides = [1, 1]} : vector<8x4xi32> to vector<8x1xi32>
    %49 = vector.broadcast %13 : vector<1x289xi32> to vector<8x289xi32>
    %50 = vector.broadcast %48 : vector<8x1xi32> to vector<8x289xi32>
    %51 = arith.subi %49, %50 : vector<8x289xi32>
    %c0_i32_18 = arith.constant 0 : i32
    %52 = vector.broadcast %c0_i32_18 : i32 to vector<8x289xi32>
    %53 = arith.cmpi eq, %51, %52 : vector<8x289xi32>
    %cst_19 = arith.constant 0.000000e+00 : f32
    %54 = vector.broadcast %cst_19 : f32 to vector<8x289xf32>
    %55 = arith.select %53, %15, %54 : vector<8x289xi1>, vector<8x289xf32>
    %cst_20 = arith.constant dense<0.000000e+00> : vector<8xf32>
    %56 = vector.multi_reduction <add>, %55, %cst_20 [1] : vector<8x289xf32> to vector<8xf32>
    %57 = vector.shape_cast %56 : vector<8xf32> to vector<8x1xf32>
    %c1_i32_21 = arith.constant 1 : i32
    %58 = vector.broadcast %c1_i32_21 : i32 to vector<8x289xi32>
    %59 = arith.cmpi eq, %51, %58 : vector<8x289xi32>
    %cst_22 = arith.constant 0.000000e+00 : f32
    %60 = vector.broadcast %cst_22 : f32 to vector<8x289xf32>
    %61 = arith.select %59, %15, %60 : vector<8x289xi1>, vector<8x289xf32>
    %cst_23 = arith.constant dense<0.000000e+00> : vector<8xf32>
    %62 = vector.multi_reduction <add>, %61, %cst_23 [1] : vector<8x289xf32> to vector<8xf32>
    %63 = vector.shape_cast %62 : vector<8xf32> to vector<8x1xf32>
    %64 = vector.extract_strided_slice %9 {offsets = [0, 0], sizes = [8, 1], strides = [1, 1]} : vector<8x4xf32> to vector<8x1xf32>
    %65 = vector.extract_strided_slice %11 {offsets = [0, 0], sizes = [8, 1], strides = [1, 1]} : vector<8x4xf32> to vector<8x1xf32>
    %66 = arith.subf %31, %25 : vector<8x1xf32>
    %cst_24 = arith.constant 0.000000e+00 : f32
    %67 = vector.broadcast %cst_24 : f32 to vector<8x1xf32>
    %68 = arith.maximumf %66, %67 : vector<8x1xf32>
    %69 = math.absf %66 : vector<8x1xf32>
    %cst_25 = arith.constant 0.000000e+00 : f32
    %70 = vector.broadcast %cst_25 : f32 to vector<8x1xf32>
    %71 = arith.subf %70, %69 : vector<8x1xf32>
    %72 = math.exp %71 : vector<8x1xf32>
    %73 = math.log1p %72 : vector<8x1xf32>
    %74 = arith.addf %68, %73 : vector<8x1xf32>
    %75 = arith.mulf %64, %74 : vector<8x1xf32>
    %76 = arith.subf %74, %66 : vector<8x1xf32>
    %77 = arith.mulf %65, %76 : vector<8x1xf32>
    %78 = arith.addf %75, %77 : vector<8x1xf32>
    %79 = vector.extract_strided_slice %9 {offsets = [0, 1], sizes = [8, 1], strides = [1, 1]} : vector<8x4xf32> to vector<8x1xf32>
    %80 = vector.extract_strided_slice %11 {offsets = [0, 1], sizes = [8, 1], strides = [1, 1]} : vector<8x4xf32> to vector<8x1xf32>
    %81 = arith.subf %47, %41 : vector<8x1xf32>
    %cst_26 = arith.constant 0.000000e+00 : f32
    %82 = vector.broadcast %cst_26 : f32 to vector<8x1xf32>
    %83 = arith.maximumf %81, %82 : vector<8x1xf32>
    %84 = math.absf %81 : vector<8x1xf32>
    %cst_27 = arith.constant 0.000000e+00 : f32
    %85 = vector.broadcast %cst_27 : f32 to vector<8x1xf32>
    %86 = arith.subf %85, %84 : vector<8x1xf32>
    %87 = math.exp %86 : vector<8x1xf32>
    %88 = math.log1p %87 : vector<8x1xf32>
    %89 = arith.addf %83, %88 : vector<8x1xf32>
    %90 = arith.mulf %79, %89 : vector<8x1xf32>
    %91 = arith.subf %89, %81 : vector<8x1xf32>
    %92 = arith.mulf %80, %91 : vector<8x1xf32>
    %93 = arith.addf %90, %92 : vector<8x1xf32>
    %94 = vector.extract_strided_slice %9 {offsets = [0, 3], sizes = [8, 1], strides = [1, 1]} : vector<8x4xf32> to vector<8x1xf32>
    %95 = vector.extract_strided_slice %11 {offsets = [0, 3], sizes = [8, 1], strides = [1, 1]} : vector<8x4xf32> to vector<8x1xf32>
    %96 = arith.subf %63, %57 : vector<8x1xf32>
    %cst_28 = arith.constant 0.000000e+00 : f32
    %97 = vector.broadcast %cst_28 : f32 to vector<8x1xf32>
    %98 = arith.maximumf %96, %97 : vector<8x1xf32>
    %99 = math.absf %96 : vector<8x1xf32>
    %cst_29 = arith.constant 0.000000e+00 : f32
    %100 = vector.broadcast %cst_29 : f32 to vector<8x1xf32>
    %101 = arith.subf %100, %99 : vector<8x1xf32>
    %102 = math.exp %101 : vector<8x1xf32>
    %103 = math.log1p %102 : vector<8x1xf32>
    %104 = arith.addf %98, %103 : vector<8x1xf32>
    %105 = arith.mulf %94, %104 : vector<8x1xf32>
    %106 = arith.subf %104, %96 : vector<8x1xf32>
    %107 = arith.mulf %95, %106 : vector<8x1xf32>
    %108 = arith.addf %105, %107 : vector<8x1xf32>
    %109 = arith.addf %78, %93 : vector<8x1xf32>
    %cst_30 = arith.constant 2.000000e+00 : f32
    %110 = vector.broadcast %cst_30 : f32 to vector<8x1xf32>
    %111 = arith.mulf %110, %108 : vector<8x1xf32>
    %112 = arith.addf %109, %111 : vector<8x1xf32>
    %c0_31 = arith.constant 0 : index
    %c0_32 = arith.constant 0 : index
    %113 = vector.load %arg4[%c0_31, %c0_32] : memref<8x1xf32, #tpu.memory_space<vmem>>, vector<8x1xf32>
    tpu.vector_store %arg4[%c0_31, %c0_32], %112 {strides = array<i32>} : memref<8x1xf32, #tpu.memory_space<vmem>>, vector<8x1xf32>,
    return
  }
  func.func @transform_0(%arg0: i32) -> (i32, i32) {
    %c0_i32 = arith.constant 0 : i32
    %c0_i32_0 = arith.constant 0 : i32
    return %arg0, %c0_i32 : i32, i32
  }
  func.func @transform_1(%arg0: i32) -> (i32, i32) {
    %c0_i32 = arith.constant 0 : i32
    %c0_i32_0 = arith.constant 0 : i32
    %c0_i32_1 = arith.constant 0 : i32
    return %c0_i32, %c0_i32_0 : i32, i32
  }
  func.func @transform_2(%arg0: i32) -> (i32, i32) {
    %c0_i32 = arith.constant 0 : i32
    %c0_i32_0 = arith.constant 0 : i32
    return %arg0, %c0_i32 : i32, i32
  }
  func.func @transform_3(%arg0: i32) -> (i32, i32) {
    %c0_i32 = arith.constant 0 : i32
    %c0_i32_0 = arith.constant 0 : i32
    return %arg0, %c0_i32 : i32, i32
  }
}

</mosaic_0001>

<bundles_post_ra>
// kernel: tpu_custom_call.1
= control target key start
LH: loop header
LB: loop body
LE: loop exit
PB: predicated region body
PF: predicated region fallthrough
CT: control target
= control target key end

     0   :  { %8 = vsyncpa [#allocation3], 0  ;;  %s296_s12 = smov [#allocation2]   ;;  %s396_s0 = inlined_call_operand.vmem [shape: f32[8,4], index: 0, kind: input, shape index: {}]   ;;  %s397_s1 = inlined_call_operand.vmem [shape: s32[2,289], index: 1, kind: input, shape index: {}]   ;;  %s398_s2 = inlined_call_operand.hbm [shape: f32[8,1156], index: 2, kind: input, shape index: {}]   ;;  %s399_s3 = inlined_call_operand.vmem [shape: f32[8,1], index: 3, kind: output, shape index: {}]  }
   0x1   :  { %s19_s13 = sshll.u32 %s296_s12, 4  ;;  %s272_s16 = scalar_lea.hbm %s398_s2, 1280  ;;  %s20_s13 = int_to_ptr.vmem [resolvable:$true] %s19_s13 }
   0x2   :  { %p273_p0 = scmp.ne.s32.totalorder %s398_s2, %s272_s16  ;;  %p276_p1 = scmp.lt.u32.totalorder %s272_s16, %s398_s2 }
   0x4   :  { %p278_p2 = pnand %p276_p1, %p273_p0 }
   0x6   :  { %281 = shalt.err (!%p278_p2)
}
   0x7   :  { %s282_s21 = scalar_lea.vmem %s20_s13, 1280  ;;  %p287_p4 = scmp.lt.s32.totalorder %s20_s13, %s20_s13 }
   0x8   :  { %p283_p3 = scmp.ne.s32.totalorder %s20_s13, %s282_s21  ;;  %p288_p5 = scmp.lt.s32.totalorder %s282_s21, %s282_s21 }
   0xa   :  { %p289_p6 = por %p288_p5, %p287_p4 }
   0xc   :  { %p290_p7 = pnand %p289_p6, %p283_p3 }
   0xe   :  { %293 = shalt.err (!%p290_p7)
}
   0xf   :  { %22 = dma.hbm_to_vmem [thread:$0]  %s398_s2, 1280, %s20_s13, [#allocation3]  }
  0x10   :  { %294 = dma.done.wait [#allocation3], 1280  }
  0x11   :  { %295 = vsyncadd [#allocation3], 4294966016  ;;  %v297_v0 = vmov 1   ;;  %v26_v1 = vld [vmem:[%s396_s0] sm:$0xff]  ;;  %v338_v2 = vld [vmem:[#allocation2 + $0x10] sm:$0xff]  ;;  %s298_s26 = smov 95   ;;  %v44_v11 = vlaneseq }
  0x12   :  { %256 = vset.pattern.permute.xlu0 %v297_v0  ;;  %v340_v3 = vmul.f32 16.0, %v26_v1  ;;  %137 = vrot.lane.b32.xlu1 %v338_v2, %s298_s26  ;;  %v42_v4 = vld [vmem:[#allocation2 + $0x18] sm:$0xff]  ;;  %v43_v7 = vld [vmem:[#allocation2 + $0x20] sm:$0xff]  ;;  %v299_v9 = vmov 3   ;;  %v300_v10 = vmov 0   ;;  %vm143_vm1 = vcmask 777216  }
  0x13   :  { %v45_v12 = vshrl.u32 %v44_v11, 7  ;;  %v246_v17 = vld [vmem:[%s397_s1 + $0x1] ss:$2 sm:$0x7]  ;;  %v357_v28 = vld [vmem:[#allocation2 + $0x8] sm:$0xff]  ;;  %vm69_vm2 = vcmask 269312  }
  0x14   :  { %v247_v5 = vtrunc.f32 %v340_v3  ;;  %v36_v22 = vld [vmem:[%s397_s1] ss:$2 sm:$0x7]  ;;  %s301_s1 = smov 127   ;;  %s302_s29 = smov 125  }
  0x15   :  { %v46_v14 = vsub.s32 0, %v45_v12  ;;  %v50_v15 = vsub.s32 1, %v45_v12  ;;  %v54_v16 = vsub.s32 2, %v45_v12  ;;  %v355_v27 = vld [vmem:[#allocation2] sm:$0xff] }
  0x16   :  { %v248_v6 = vcvt.f32.s32 %v247_v5  ;;  %139 = vrot.lane.b32.xlu1 %v42_v4, %s298_s26 }
  0x17   :  { %v88_v18 = vrot.slane %v246_v17, %v46_v14  ;;  %v92_v19 = vrot.slane %v246_v17, %v50_v15  ;;  %v96_v20 = vrot.slane %v246_v17, %v54_v16  ;;  %v47_v30 = vrot.slane %v36_v22, %v46_v14 }
  0x18   :  { %vm29_vm0 = vcmp.lt.s32.totalorder %v248_v6, 15  ;;  %v51_v31 = vrot.slane %v36_v22, %v50_v15  ;;  %v55_v32 = vrot.slane %v36_v22, %v54_v16 }
  0x19   :  { %v344_v8 = vsel %vm29_vm0, %v248_v6, 15 }
  0x1a   :  { %98 = vperm.xlu0 %256, %v344_v8   ;;  %141 = vrot.lane.b32.xlu1 %v43_v7, %s298_s26 }
  0x1e   :  { %257 = vset.pattern.permute.xlu0 %v299_v9 }
  0x1f   :  { %126 = vperm.xlu0 %257, %v344_v8  }
  0x23   :  { %258 = vset.pattern.permute.xlu0 %v300_v10 }
  0x24   :  { %57 = vperm.xlu0 %258, %v344_v8  }
  0x28   :  { %259 = vset.pattern.permute.xlu0 %v299_v9 }
  0x84   :  { %v138_v13 = vpop.permute.xlu1 %137 }
  0x88   :  { %v140_v21 = vpop.permute.xlu1 %139 }
  0x89   :  { %v144_v29 = vsel %vm143_vm1, %v138_v13, %v140_v21 }
  0x8c   :  { %v142_v33 = vpop.permute.xlu1 %141 }
  0x8d   :  { %v145_v45 = vsel %vm143_vm1, %v140_v21, %v142_v33 }
  0x99   :  { %v99_v23 = vpop.permute.xlu0 %98 }
  0x9a   :  { %v100_v24 = vsub.s32 %v88_v18, %v99_v23  ;;  %v101_v25 = vsub.s32 %v92_v19, %v99_v23  ;;  %v102_v26 = vsub.s32 %v96_v20, %v99_v23 }
  0x9c   :  { %vm114_vm3 = vcmp.eq.s32.totalorder %v100_v24, 1  ;;  %vm115_vm4 = vcmp.eq.s32.totalorder %v101_v25, 1  ;;  %vm116_vm5 = vcmp.eq.s32.totalorder %v102_v26, 1  ;;  %vm103_vm6 = vcmp.eq.s32.totalorder %v100_v24, 0 }
  0x9d   :  { %v117_v34 = vsel %vm114_vm3, %v355_v27, 0.0  ;;  %v118_v35 = vsel %vm115_vm4, %v357_v28, 0.0  ;;  %v119_v36 = vsel %vm116_vm5, %v338_v2, 0.0  ;;  %vm104_vm7 = vcmp.eq.s32.totalorder %v101_v25, 0 }
  0x9e   :  { %v127_v37 = vpop.permute.xlu0 %126  ;;  %v120_v38 = vadd.f32 %v118_v35, %v117_v34  ;;  %v121_v39 = vsel %vm69_vm2, %v119_v36, 0.0  ;;  %vm105_vm8 = vcmp.eq.s32.totalorder %v102_v26, 0  ;;  %v106_v40 = vsel %vm103_vm6, %v355_v27, 0.0 }
  0x9f   :  { %v128_v41 = vsub.s32 %v88_v18, %v127_v37  ;;  %v129_v42 = vsub.s32 %v92_v19, %v127_v37  ;;  %v130_v43 = vsub.s32 %v96_v20, %v127_v37  ;;  %v107_v44 = vsel %vm104_vm7, %v357_v28, 0.0 }
  0xa0   :  { %v122_v46 = vadd.f32 %v121_v39, %v120_v38  ;;  %v108_v47 = vsel %vm105_vm8, %v338_v2, 0.0  ;;  %v109_v48 = vadd.f32 %v107_v44, %v106_v40  ;;  %v31_v40 = vadd.s32 1, %v344_v8 }
  0xa1   :  { %v110_v49 = vsel %vm69_vm2, %v108_v47, 0.0  ;;  %vm157_vm9 = vcmp.eq.s32.totalorder %v128_v41, 1  ;;  %vm158_vm10 = vcmp.eq.s32.totalorder %v129_v42, 1  ;;  %vm159_vm11 = vcmp.eq.s32.totalorder %v130_v43, 1 }
  0xa2   :  { %123 = vadd.xlane.f32.xlu0 %v122_v46  ;;  %v111_v50 = vadd.f32 %v110_v49, %v109_v48  ;;  %v160_v51 = vsel %vm157_vm9, %v144_v29, 0.0  ;;  %v161_v52 = vsel %vm158_vm10, %v145_v45, 0.0  ;;  %v162_v53 = vsel %vm159_vm11, %v142_v33, 0.0 }
  0xa3   :  { %v163_v54 = vadd.f32 %v161_v52, %v160_v51  ;;  %v164_v55 = vsel %vm69_vm2, %v162_v53, 0.0  ;;  %vm131_vm12 = vcmp.eq.s32.totalorder %v128_v41, 0  ;;  %vm132_vm13 = vcmp.eq.s32.totalorder %v129_v42, 0  ;;  %v58_v56 = vpop.permute.xlu0 %57 }
  0xa4   :  { %112 = vadd.xlane.f32.xlu1 %v111_v50  ;;  %vm133_vm14 = vcmp.eq.s32.totalorder %v130_v43, 0  ;;  %v149_v57 = vsel %vm131_vm12, %v144_v29, 0.0  ;;  %v150_v58 = vsel %vm132_vm13, %v145_v45, 0.0  ;;  %v59_v59 = vsub.s32 %v47_v30, %v58_v56 }
  0xa5   :  { %v165_v60 = vadd.f32 %v164_v55, %v163_v54  ;;  %v151_v61 = vsel %vm133_vm14, %v142_v33, 0.0  ;;  %v152_v62 = vadd.f32 %v150_v58, %v149_v57  ;;  %v60_v63 = vsub.s32 %v51_v31, %v58_v56 }
  0xa6   :  { %v153_v0 = vsel %vm69_vm2, %v151_v61, 0.0  ;;  %v61_v1 = vsub.s32 %v55_v32, %v58_v56  ;;  %vm74_vm15 = vcmp.eq.s32.totalorder %v59_v59, 1  ;;  %vm62_vm0 = vcmp.eq.s32.totalorder %v59_v59, 0 }
  0xa7   :  { %166 = vadd.xlane.f32.xlu0 %v165_v60  ;;  %v154_v4 = vadd.f32 %v153_v0, %v152_v62  ;;  %vm75_vm1 = vcmp.eq.s32.totalorder %v60_v63, 1  ;;  %v77_v5 = vsel %vm74_vm15, %v355_v27, 0.0  ;;  %vm63_vm3 = vcmp.eq.s32.totalorder %v60_v63, 0 }
  0xa8   :  { %vm76_vm4 = vcmp.eq.s32.totalorder %v61_v1, 1  ;;  %v78_v6 = vsel %vm75_vm1, %v357_v28, 0.0  ;;  %vm64_vm5 = vcmp.eq.s32.totalorder %v61_v1, 0  ;;  %v65_v7 = vsel %vm62_vm0, %v355_v27, 0.0 }
  0xa9   :  { %155 = vadd.xlane.f32.xlu1 %v154_v4  ;;  %v79_v9 = vsel %vm76_vm4, %v338_v2, 0.0  ;;  %v80_v10 = vadd.f32 %v78_v6, %v77_v5  ;;  %v66_v11 = vsel %vm63_vm3, %v357_v28, 0.0  ;;  %v67_v12 = vsel %vm64_vm5, %v338_v2, 0.0 }
  0xaa   :  { %v81_v13 = vsel %vm69_vm2, %v79_v9, 0.0  ;;  %v68_v14 = vadd.f32 %v66_v11, %v65_v7  ;;  %v70_v15 = vsel %vm69_vm2, %v67_v12, 0.0  ;;  %v34_v47 = vcvt.s32.f32 %v344_v8 }
  0xab   :  { %v82_v16 = vadd.f32 %v81_v13, %v80_v10  ;;  %v32_v48 = vcvt.s32.f32 %v31_v40  ;;  %vm239_vm8 = vcmask 7168  }
  0xac   :  { %v71_v17 = vadd.f32 %v70_v15, %v68_v14  ;;  %v35_v58 = vsub.f32 %v340_v3, %v34_v47 }
  0xad   :  { %83 = vadd.xlane.f32.xlu0 %v82_v16  ;;  %v33_v57 = vsub.f32 %v32_v48, %v340_v3 }
  0xae   :  { %72 = vadd.xlane.f32.xlu1 %v71_v17 }
 0x12f   :  { %v124_v18 = vpop.xlane.xlu0 %123 }
 0x131   :  { %v113_v19 = vpop.xlane.xlu1 %112 }
 0x132   :  { %v188_v20 = vsub.f32 %v124_v18, %v113_v19 }
 0x134   :  { %v190_v21 = vand.u32 2147483647, %v188_v20  ;;  %v167_v22 = vpop.xlane.xlu0 %166  ;;  %v189_v52 = vmax.f32 %v188_v20, 0.0 }
 0x136   :  { %v191_v23 = vsub.f32 0.0, %v190_v21  ;;  %v156_v24 = vpop.xlane.xlu1 %155 }
 0x137   :  { %v379_v25 = vsub.f32 %v167_v22, %v156_v24 }
 0x138   :  { %v192_v26 = vmul.f32 1.442695, %v191_v23 }
 0x139   :  { %v210_v2 = vand.u32 2147483647, %v379_v25  ;;  %v209_v0 = vmax.f32 %v379_v25, 0.0 }
 0x13a   :  { %260 = vpow2.f32 %v192_v26  ;;  %v84_v27 = vpop.xlane.xlu0 %83 }
 0x13b   :  { %v211_v28 = vsub.f32 0.0, %v210_v2  ;;  %v73_v29 = vpop.xlane.xlu1 %72 }
 0x13c   :  { %v382_v30 = vsub.f32 %v84_v27, %v73_v29 }
 0x13d   :  { %v212_v31 = vmul.f32 1.442695, %v211_v28 }
 0x13e   :  { %v170_v32 = vand.u32 2147483647, %v382_v30  ;;  %v169_v11 = vmax.f32 %v382_v30, 0.0 }
 0x13f   :  { %262 = vpow2.f32 %v212_v31 }
 0x140   :  { %v171_v33 = vsub.f32 0.0, %v170_v32 }
 0x142   :  { %v172_v34 = vmul.f32 1.442695, %v171_v33 }
 0x144   :  { %v261_v35 = vpop.eup %260  ;;  %264 = vpow2.f32 %v172_v34 }
 0x145   :  { %v194_v36 = vadd.f32 1.0, %v261_v35  ;;  %v197_v38 = vmul.f32 -0.5, %v261_v35  ;;  %v200_v43 = vand.u32 2147483647, %v261_v35 }
 0x147   :  { %266 = vlog2.f32 %v194_v36  ;;  %v198_v42 = vadd.f32 1.0, %v197_v38  ;;  %vm201_vm2 = vcmp.lt.f32.partialorder %v200_v43, 0.0004427343 }
 0x149   :  { %v263_v37 = vpop.eup %262  ;;  %v199_v50 = vmul.f32 %v261_v35, %v198_v42 }
 0x14a   :  { %v214_v39 = vadd.f32 1.0, %v263_v37  ;;  %v217_v44 = vmul.f32 -0.5, %v263_v37  ;;  %v220_v55 = vand.u32 2147483647, %v263_v37 }
 0x14c   :  { %268 = vlog2.f32 %v214_v39  ;;  %v218_v53 = vadd.f32 1.0, %v217_v44  ;;  %vm221_vm6 = vcmp.lt.f32.partialorder %v220_v55, 0.0004427343 }
 0x14e   :  { %v265_v41 = vpop.eup %264  ;;  %v219_v8 = vmul.f32 %v263_v37, %v218_v53 }
 0x14f   :  { %v174_v45 = vadd.f32 1.0, %v265_v41  ;;  %v177_v51 = vmul.f32 -0.5, %v265_v41  ;;  %v180_v63 = vand.u32 2147483647, %v265_v41 }
 0x151   :  { %v267_v46 = vpop.eup %266  ;;  %270 = vlog2.f32 %v174_v45  ;;  %v178_v60 = vadd.f32 1.0, %v177_v51  ;;  %vm181_vm7 = vcmp.lt.f32.partialorder %v180_v63, 0.0004427343 }
 0x152   :  { %v196_v49 = vmul.f32 0.6931472, %v267_v46 }
 0x153   :  { %v179_v7 = vmul.f32 %v265_v41, %v178_v60 }
 0x154   :  { %v202_v54 = vsel %vm201_vm2, %v199_v50, %v196_v49 }
 0x155   :  { %v203_v56 = vadd.f32 %v202_v54, %v189_v52 }
 0x156   :  { %v269_v59 = vpop.eup %268 }
 0x157   :  { %v205_v61 = vsub.f32 %v203_v56, %v188_v20  ;;  %v216_v62 = vmul.f32 0.6931472, %v269_v59  ;;  %v204_v4 = vmul.f32 %v203_v56, %v33_v57 }
 0x159   :  { %v222_v1 = vsel %vm221_vm6, %v219_v8, %v216_v62  ;;  %v206_v5 = vmul.f32 %v205_v61, %v35_v58 }
 0x15a   :  { %v223_v6 = vadd.f32 %v222_v1, %v209_v0 }
 0x15b   :  { %v271_v9 = vpop.eup %270  ;;  %v207_v10 = vadd.f32 %v206_v5, %v204_v4 }
 0x15c   :  { %v225_v3 = vsub.f32 %v223_v6, %v379_v25  ;;  %v176_v12 = vmul.f32 0.6931472, %v271_v9  ;;  %v224_v13 = vmul.f32 %v223_v6, %v33_v57 }
 0x15d   :  { %229 = vrot.lane.b32.xlu1 %v207_v10, %s301_s1 }
 0x15e   :  { %v226_v14 = vmul.f32 %v225_v3, %v35_v58  ;;  %v182_v15 = vsel %vm181_vm7, %v179_v7, %v176_v12 }
 0x15f   :  { %v183_v16 = vadd.f32 %v182_v15, %v169_v11 }
 0x160   :  { %v227_v17 = vadd.f32 %v226_v14, %v224_v13 }
 0x161   :  { %v185_v18 = vsub.f32 %v183_v16, %v382_v30  ;;  %v184_v19 = vmul.f32 %v183_v16, %v33_v57 }
 0x162   :  { %v233_v20 = vmul.f32 2.0, %v227_v17 }
 0x163   :  { %v186_v21 = vmul.f32 %v185_v18, %v35_v58 }
 0x164   :  { %235 = vrot.lane.b32.xlu0 %v233_v20, %s302_s29 }
 0x165   :  { %v187_v22 = vadd.f32 %v186_v21, %v184_v19 }
 0x1cf   :  { %v230_v23 = vpop.permute.xlu1 %229 }
 0x1d0   :  { %v232_v24 = vadd.f32 %v230_v23, %v187_v22 }
 0x1d6   :  { %v236_v25 = vpop.permute.xlu0 %235 }
 0x1d7   :  { %v238_v26 = vadd.f32 %v236_v25, %v232_v24 }
 0x1d9   :  { %240 = vst.msk [vmem:[%s399_s3] sm:$0xff] %vm239_vm8, %v238_v26 }
 0x1da   :  { %245 = vsyncpa [#allocation3], 1 }

</bundles_post_ra>
